<compile_context>
chip_gen: v5e
topology: v5e:2x2
jax: 0.10.0
libtpu: 0.0.40
codegen_flags: <defaults>
</compile_context>

<pallas_src>
import functools

import jax
import jax.numpy as jnp
from jax import lax
from jax.experimental import pallas as pl
from jax.experimental.pallas import tpu as pltpu

# Double-buffered (depth + 4-channel out) block budget.  Blocks (~8 MiB) plus
# in-kernel temporaries (~4 MiB) stay well inside the 32 MiB scoped-VMEM limit
# requested below, which is valid on every generation (v5e/v6e/v7x).
_BLOCK_BUDGET_BYTES = 8 * 1024 * 1024
_VMEM_LIMIT_BYTES = 32 * 1024 * 1024


def _read_invk(invk_ref, b):
    """Read the 9 inv_K[:3, :3] scalars for batch b from 1-D SMEM."""
    base = b * 9
    return [invk_ref[base + j] for j in range(9)]


def _backproject_rows_kernel(invk_ref, depth_ref, out_ref, *, tile_rows, width):
    # Row-tiled path (lane-dense whenever width % 128 == 0).
    # invk_ref : SMEM (N*9,)    depth_ref: VMEM (1, TR, W)    out_ref: VMEM (4, TR, W)
    b = pl.program_id(0)
    t = pl.program_id(1)

    d = depth_ref[0]                                                  # (TR, W)
    shape = (tile_rows, width)
    # int32 iota + single convert (no extra int temporaries).
    x = lax.broadcasted_iota(jnp.int32, shape, 1).astype(jnp.float32)
    y = (lax.broadcasted_iota(jnp.int32, shape, 0)
         + t * tile_rows).astype(jnp.float32)

    k00, k01, k02, k10, k11, k12, k20, k21, k22 = _read_invk(invk_ref, b)
    out_ref[0] = (k00 * x + k01 * y + k02) * d
    out_ref[1] = (k10 * x + k11 * y + k12) * d
    out_ref[2] = (k20 * x + k21 * y + k22) * d
    out_ref[3] = jnp.ones_like(d)


def _backproject_flat_kernel(invk_ref, depth_ref, out_ref, *, tile_chunks, width):
    # Lane-dense flat path for width % 128 != 0: pixels reshaped to
    # (HW/128, 128); x/y recovered from the flat index with a guarded float
    # divide (a handful of VPU ops with plenty of slack — kernel is DMA-bound).
    # invk_ref : SMEM (N*9,)    depth_ref: VMEM (1, TC, 128)   out_ref: VMEM (4, TC, 128)
    b = pl.program_id(0)
    t = pl.program_id(1)

    d = depth_ref[0]                                                  # (TC, 128)
    shape = (tile_chunks, 128)
    idx_i = (lax.broadcasted_iota(jnp.int32, shape, 0) * 128
             + lax.broadcasted_iota(jnp.int32, shape, 1)
             + t * (tile_chunks * 128))
    idx = idx_i.astype(jnp.float32)                  # exact for HW < 2^24

    w_f = jnp.float32(width)
    y = jnp.floor(idx * jnp.float32(1.0 / width))
    x = idx - y * w_f
    # One-step correction for rounding in the reciprocal (|error| << 1).
    y = y + jnp.where(x >= w_f, 1.0, 0.0) - jnp.where(x < 0.0, 1.0, 0.0)
    x = idx - y * w_f

    k00, k01, k02, k10, k11, k12, k20, k21, k22 = _read_invk(invk_ref, b)
    out_ref[0] = (k00 * x + k01 * y + k02) * d
    out_ref[1] = (k10 * x + k11 * y + k12) * d
    out_ref[2] = (k20 * x + k21 * y + k22) * d
    out_ref[3] = jnp.ones_like(d)


def _pick_tile(total, unit_bytes, budget_bytes, want_min_tiles=1):
    """Tile size along the blocked (second-to-last) dim.

    Result is a multiple of 8 (TPU sublane tiling) or equal to `total`.
    `unit_bytes` is the double-buffered VMEM cost per unit of this dim.
    `want_min_tiles >= 2` forces a grid split (keeps both v7x TensorCores busy
    for single-image batches).
    """
    max_units = max(1, int(budget_bytes // unit_bytes))
    if want_min_tiles > 1:
        max_units = min(max_units, -(-total // want_min_tiles))
    if max_units >= total:
        return total
    tile = max(8, (max_units // 8) * 8)
    if tile >= total:
        return total
    # Prefer an even division of `total` (uniform steps, no clipped tail),
    # but don't shrink the tile by more than ~25% to find one.
    lo = max(8, (tile * 3) // 4)
    for cand in range(tile, lo - 1, -8):
        if total % cand == 0:
            return cand
    return tile


@functools.partial(jax.jit, static_argnames=("height", "width", "img_like_out"))
def backprojection(depth, inv_K, *, height, width, img_like_out=False):
    """Pallas equivalent of Backprojection.forward.

    depth : (N, 1, H, W) float32
    inv_K : (N, 4, 4)    float32
    returns (N, 4, H*W)  (or (N, 4, H, W) if img_like_out)
    """
    n = depth.shape[0]
    hw = height * width
    invk_flat = inv_K[:, :3, :3].reshape(n * 9)       # -> SMEM scalar prefetch

    # With N == 1, make sure there are >= 2 grid points so "parallel" axes can
    # shard across both TensorCores on v7x.
    want_min_tiles = 2 if n == 1 else 1

    compiler_params = pltpu.CompilerParams(
        dimension_semantics=("parallel", "parallel"),
        vmem_limit_bytes=_VMEM_LIMIT_BYTES)

    use_flat = (hw % 128 == 0) and (width % 128 != 0)
    if use_flat:
        total_chunks = hw // 128
        unit_bytes = 2 * (1 + 4) * 128 * 4           # double-buffered depth+out
        tile_chunks = _pick_tile(total_chunks, unit_bytes,
                                 _BLOCK_BUDGET_BYTES, want_min_tiles)
        grid = (n, pl.cdiv(total_chunks, tile_chunks))
        kernel = functools.partial(_backproject_flat_kernel,
                                   tile_chunks=tile_chunks, width=width)
        out = pl.pallas_call(
            kernel,
            out_shape=jax.ShapeDtypeStruct((n, 4, total_chunks, 128), depth.dtype),
            grid_spec=pltpu.PrefetchScalarGridSpec(
                num_scalar_prefetch=1,
                grid=grid,
                in_specs=[pl.BlockSpec((None, 1, tile_chunks, 128),
                                       lambda b, t, invk: (b, 0, t, 0))],
                out_specs=pl.BlockSpec((None, 4, tile_chunks, 128),
                                       lambda b, t, invk: (b, 0, t, 0)),
            ),
            compiler_params=compiler_params,
        )(invk_flat, depth.reshape(n, 1, total_chunks, 128))   # free reshape
    else:
        w_pad = pl.cdiv(width, 128) * 128            # lane padding inside VMEM
        unit_bytes = 2 * (1 + 4) * w_pad * 4
        tile_rows = _pick_tile(height, unit_bytes,
                               _BLOCK_BUDGET_BYTES, want_min_tiles)
        grid = (n, pl.cdiv(height, tile_rows))
        kernel = functools.partial(_backproject_rows_kernel,
                                   tile_rows=tile_rows, width=width)
        out = pl.pallas_call(
            kernel,
            out_shape=jax.ShapeDtypeStruct((n, 4, height, width), depth.dtype),
            grid_spec=pltpu.PrefetchScalarGridSpec(
                num_scalar_prefetch=1,
                grid=grid,
                in_specs=[pl.BlockSpec((None, 1, tile_rows, width),
                                       lambda b, t, invk: (b, 0, t, 0))],
                out_specs=pl.BlockSpec((None, 4, tile_rows, width),
                                       lambda b, t, invk: (b, 0, t, 0)),
            ),
            compiler_params=compiler_params,
        )(invk_flat, depth)

    # TODO(synk): downstream depth_to_normal could take (N,3,HW) with an
    # implicit homogeneous 1, saving ~20% HBM traffic; kept 4 channels to
    # preserve the module's API.
    if img_like_out:
        return out.reshape(n, 4, height, width)
    return out.reshape(n, 4, hw)


def _reference(depth, inv_K, height, width):
    """Pure-JAX reference mirroring the PyTorch forward."""
    n = depth.shape[0]
    xs = jnp.arange(width, dtype=depth.dtype)
    ys = jnp.arange(height, dtype=depth.dtype)
    xg, yg = jnp.meshgrid(xs, ys, indexing="xy")
    xy = jnp.concatenate([xg.reshape(1, -1), yg.reshape(1, -1),
                          jnp.ones((1, height * width), depth.dtype)], axis=0)
    pts = jnp.einsum("nij,jk->nik", inv_K[:, :3, :3], xy,
                     preferred_element_type=jnp.float32)          # (N, 3, HW)
    pts = depth.reshape(n, 1, -1) * pts
    ones = jnp.ones((n, 1, height * width), dtype=depth.dtype)
    return jnp.concatenate([pts, ones], axis=1)                   # (N, 4, HW)


def _check(n, h, w, key):
    k_d, k_k = jax.random.split(key)
    depth = jax.random.uniform(k_d, (n, 1, h, w), jnp.float32,
                               minval=0.1, maxval=10.0)
    inv_K = jax.random.normal(k_k, (n, 4, 4), jnp.float32)

    out = jax.block_until_ready(backprojection(depth, inv_K, height=h, width=w))
    ref = _reference(depth, inv_K, h, w)
    assert out.shape == (n, 4, h * w)
    assert jnp.allclose(out, ref, atol=1e-4, rtol=1e-4), f"mismatch ({n},{h},{w})"

    out_img = jax.block_until_ready(
        backprojection(depth, inv_K, height=h, width=w, img_like_out=True))
    assert out_img.shape == (n, 4, h, w)
    assert jnp.allclose(out_img.reshape(n, 4, -1), ref, atol=1e-4, rtol=1e-4), \
        f"img_like_out mismatch ({n},{h},{w})"


if __name__ == "__main__":
    key = jax.random.PRNGKey(0)
    k1, k2, k3 = jax.random.split(key, 3)
    _check(2, 16, 16, k1)    # flat lane-dense path (W % 128 != 0, HW % 128 == 0)
    _check(1, 32, 128, k2)   # row path, W % 128 == 0, forced 2-tile split (N == 1)
    _check(2, 12, 20, k3)    # row fallback (HW % 128 != 0), clipped/masked stores
    print("KERNEL_OK")
</pallas_src>

<mosaic_0001>
module attributes {stable_mosaic.version = 11 : i64} {
  func.func @_backproject_flat_kernel(%arg0: i32, %arg1: i32, %arg2: memref<18xf32, #tpu.memory_space<smem>>, %arg3: memref<1x1x2x128xf32, #tpu.memory_space<vmem>>, %arg4: memref<1x4x2x128xf32, #tpu.memory_space<vmem>>) attributes {dimension_semantics = [#tpu.dimension_semantics<parallel>, #tpu.dimension_semantics<parallel>], iteration_bounds = array<i64: 2, 1>, scalar_prefetch = 1 : i64, scratch_operands = 0 : i64, tpu.core_type = #tpu.core_type<tc>, window_params = [{transform_indices = @transform_0, window_bounds = array<i64: 1, 1, 2, 128>}, {transform_indices = @transform_1, window_bounds = array<i64: 1, 4, 2, 128>}]} {
    %c0 = arith.constant 0 : index
    %c0_0 = arith.constant 0 : index
    %c0_1 = arith.constant 0 : index
    %c0_2 = arith.constant 0 : index
    %0 = vector.load %arg3[%c0, %c0_0, %c0_1, %c0_2] : memref<1x1x2x128xf32, #tpu.memory_space<vmem>>, vector<1x1x2x128xf32>
    %1 = vector.shape_cast %0 : vector<1x1x2x128xf32> to vector<2x128xf32>
    %2 = tpu.iota {dimensions = array<i32: 0>} : vector<2x128xi32>
    %c128_i32 = arith.constant 128 : i32
    %3 = vector.broadcast %c128_i32 : i32 to vector<2x128xi32>
    %4 = arith.muli %2, %3 : vector<2x128xi32>
    %5 = tpu.iota {dimensions = array<i32: 1>} : vector<2x128xi32>
    %6 = arith.addi %4, %5 : vector<2x128xi32>
    %c256_i32 = arith.constant 256 : i32
    %7 = arith.muli %arg1, %c256_i32 : i32
    %8 = vector.broadcast %7 : i32 to vector<2x128xi32>
    %9 = arith.addi %6, %8 : vector<2x128xi32>
    %10 = arith.sitofp %9 : vector<2x128xi32> to vector<2x128xf32>
    %cst = arith.constant 6.250000e-02 : f32
    %11 = vector.broadcast %cst : f32 to vector<2x128xf32>
    %12 = arith.mulf %10, %11 : vector<2x128xf32>
    %13 = math.floor %12 : vector<2x128xf32>
    %cst_3 = arith.constant 1.600000e+01 : f32
    %14 = vector.broadcast %cst_3 : f32 to vector<2x128xf32>
    %15 = arith.mulf %13, %14 : vector<2x128xf32>
    %16 = arith.subf %10, %15 : vector<2x128xf32>
    %cst_4 = arith.constant 1.600000e+01 : f32
    %17 = vector.broadcast %cst_4 : f32 to vector<2x128xf32>
    %18 = arith.cmpf oge, %16, %17 : vector<2x128xf32>
    %cst_5 = arith.constant 1.000000e+00 : f32
    %cst_6 = arith.constant 0.000000e+00 : f32
    %19 = vector.broadcast %cst_5 : f32 to vector<2x128xf32>
    %20 = vector.broadcast %cst_6 : f32 to vector<2x128xf32>
    %21 = arith.select %18, %19, %20 : vector<2x128xi1>, vector<2x128xf32>
    %22 = arith.addf %13, %21 : vector<2x128xf32>
    %cst_7 = arith.constant 0.000000e+00 : f32
    %23 = vector.broadcast %cst_7 : f32 to vector<2x128xf32>
    %24 = arith.cmpf olt, %16, %23 : vector<2x128xf32>
    %cst_8 = arith.constant 1.000000e+00 : f32
    %cst_9 = arith.constant 0.000000e+00 : f32
    %25 = vector.broadcast %cst_8 : f32 to vector<2x128xf32>
    %26 = vector.broadcast %cst_9 : f32 to vector<2x128xf32>
    %27 = arith.select %24, %25, %26 : vector<2x128xi1>, vector<2x128xf32>
    %28 = arith.subf %22, %27 : vector<2x128xf32>
    %cst_10 = arith.constant 1.600000e+01 : f32
    %29 = vector.broadcast %cst_10 : f32 to vector<2x128xf32>
    %30 = arith.mulf %28, %29 : vector<2x128xf32>
    %31 = arith.subf %10, %30 : vector<2x128xf32>
    %c9_i32 = arith.constant 9 : i32
    %32 = arith.muli %arg0, %c9_i32 : i32
    %c0_i32 = arith.constant 0 : i32
    %33 = arith.addi %32, %c0_i32 : i32
    %34 = arith.index_cast %33 : i32 to index
    %35 = memref.load %arg2[%34] : memref<18xf32, #tpu.memory_space<smem>>
    %c1_i32 = arith.constant 1 : i32
    %36 = arith.addi %32, %c1_i32 : i32
    %37 = arith.index_cast %36 : i32 to index
    %38 = memref.load %arg2[%37] : memref<18xf32, #tpu.memory_space<smem>>
    %c2_i32 = arith.constant 2 : i32
    %39 = arith.addi %32, %c2_i32 : i32
    %40 = arith.index_cast %39 : i32 to index
    %41 = memref.load %arg2[%40] : memref<18xf32, #tpu.memory_space<smem>>
    %c3_i32 = arith.constant 3 : i32
    %42 = arith.addi %32, %c3_i32 : i32
    %43 = arith.index_cast %42 : i32 to index
    %44 = memref.load %arg2[%43] : memref<18xf32, #tpu.memory_space<smem>>
    %c4_i32 = arith.constant 4 : i32
    %45 = arith.addi %32, %c4_i32 : i32
    %46 = arith.index_cast %45 : i32 to index
    %47 = memref.load %arg2[%46] : memref<18xf32, #tpu.memory_space<smem>>
    %c5_i32 = arith.constant 5 : i32
    %48 = arith.addi %32, %c5_i32 : i32
    %49 = arith.index_cast %48 : i32 to index
    %50 = memref.load %arg2[%49] : memref<18xf32, #tpu.memory_space<smem>>
    %c6_i32 = arith.constant 6 : i32
    %51 = arith.addi %32, %c6_i32 : i32
    %52 = arith.index_cast %51 : i32 to index
    %53 = memref.load %arg2[%52] : memref<18xf32, #tpu.memory_space<smem>>
    %c7_i32 = arith.constant 7 : i32
    %54 = arith.addi %32, %c7_i32 : i32
    %55 = arith.index_cast %54 : i32 to index
    %56 = memref.load %arg2[%55] : memref<18xf32, #tpu.memory_space<smem>>
    %c8_i32 = arith.constant 8 : i32
    %57 = arith.addi %32, %c8_i32 : i32
    %58 = arith.index_cast %57 : i32 to index
    %59 = memref.load %arg2[%58] : memref<18xf32, #tpu.memory_space<smem>>
    %60 = vector.broadcast %35 : f32 to vector<2x128xf32>
    %61 = arith.mulf %60, %31 : vector<2x128xf32>
    %62 = vector.broadcast %38 : f32 to vector<2x128xf32>
    %63 = arith.mulf %62, %28 : vector<2x128xf32>
    %64 = arith.addf %61, %63 : vector<2x128xf32>
    %65 = vector.broadcast %41 : f32 to vector<2x128xf32>
    %66 = arith.addf %64, %65 : vector<2x128xf32>
    %67 = arith.mulf %66, %1 : vector<2x128xf32>
    %c0_11 = arith.constant 0 : index
    %c0_12 = arith.constant 0 : index
    %c0_13 = arith.constant 0 : index
    %c0_14 = arith.constant 0 : index
    %68 = vector.load %arg4[%c0_11, %c0_12, %c0_13, %c0_14] : memref<1x4x2x128xf32, #tpu.memory_space<vmem>>, vector<1x1x2x128xf32>
    %69 = vector.shape_cast %68 : vector<1x1x2x128xf32> to vector<2x128xf32>
    %70 = vector.shape_cast %67 : vector<2x128xf32> to vector<1x1x2x128xf32>
    tpu.vector_store %arg4[%c0_11, %c0_12, %c0_13, %c0_14], %70 {strides = array<i32>} : memref<1x4x2x128xf32, #tpu.memory_space<vmem>>, vector<1x1x2x128xf32>,
    %71 = vector.broadcast %44 : f32 to vector<2x128xf32>
    %72 = arith.mulf %71, %31 : vector<2x128xf32>
    %73 = vector.broadcast %47 : f32 to vector<2x128xf32>
    %74 = arith.mulf %73, %28 : vector<2x128xf32>
    %75 = arith.addf %72, %74 : vector<2x128xf32>
    %76 = vector.broadcast %50 : f32 to vector<2x128xf32>
    %77 = arith.addf %75, %76 : vector<2x128xf32>
    %78 = arith.mulf %77, %1 : vector<2x128xf32>
    %c0_15 = arith.constant 0 : index
    %c1 = arith.constant 1 : index
    %c0_16 = arith.constant 0 : index
    %c0_17 = arith.constant 0 : index
    %79 = vector.load %arg4[%c0_15, %c1, %c0_16, %c0_17] : memref<1x4x2x128xf32, #tpu.memory_space<vmem>>, vector<1x1x2x128xf32>
    %80 = vector.shape_cast %79 : vector<1x1x2x128xf32> to vector<2x128xf32>
    %81 = vector.shape_cast %78 : vector<2x128xf32> to vector<1x1x2x128xf32>
    tpu.vector_store %arg4[%c0_15, %c1, %c0_16, %c0_17], %81 {strides = array<i32>} : memref<1x4x2x128xf32, #tpu.memory_space<vmem>>, vector<1x1x2x128xf32>,
    %82 = vector.broadcast %53 : f32 to vector<2x128xf32>
    %83 = arith.mulf %82, %31 : vector<2x128xf32>
    %84 = vector.broadcast %56 : f32 to vector<2x128xf32>
    %85 = arith.mulf %84, %28 : vector<2x128xf32>
    %86 = arith.addf %83, %85 : vector<2x128xf32>
    %87 = vector.broadcast %59 : f32 to vector<2x128xf32>
    %88 = arith.addf %86, %87 : vector<2x128xf32>
    %89 = arith.mulf %88, %1 : vector<2x128xf32>
    %c0_18 = arith.constant 0 : index
    %c2 = arith.constant 2 : index
    %c0_19 = arith.constant 0 : index
    %c0_20 = arith.constant 0 : index
    %90 = vector.load %arg4[%c0_18, %c2, %c0_19, %c0_20] : memref<1x4x2x128xf32, #tpu.memory_space<vmem>>, vector<1x1x2x128xf32>
    %91 = vector.shape_cast %90 : vector<1x1x2x128xf32> to vector<2x128xf32>
    %92 = vector.shape_cast %89 : vector<2x128xf32> to vector<1x1x2x128xf32>
    tpu.vector_store %arg4[%c0_18, %c2, %c0_19, %c0_20], %92 {strides = array<i32>} : memref<1x4x2x128xf32, #tpu.memory_space<vmem>>, vector<1x1x2x128xf32>,
    %cst_21 = arith.constant 1.000000e+00 : f32
    %93 = vector.broadcast %cst_21 : f32 to vector<2x128xf32>
    %c0_22 = arith.constant 0 : index
    %c3 = arith.constant 3 : index
    %c0_23 = arith.constant 0 : index
    %c0_24 = arith.constant 0 : index
    %94 = vector.load %arg4[%c0_22, %c3, %c0_23, %c0_24] : memref<1x4x2x128xf32, #tpu.memory_space<vmem>>, vector<1x1x2x128xf32>
    %95 = vector.shape_cast %94 : vector<1x1x2x128xf32> to vector<2x128xf32>
    %96 = vector.shape_cast %93 : vector<2x128xf32> to vector<1x1x2x128xf32>
    tpu.vector_store %arg4[%c0_22, %c3, %c0_23, %c0_24], %96 {strides = array<i32>} : memref<1x4x2x128xf32, #tpu.memory_space<vmem>>, vector<1x1x2x128xf32>,
    return
  }
  func.func @transform_0(%arg0: i32, %arg1: i32, %arg2: memref<18xf32, #tpu.memory_space<smem>>) -> (i32, i32, i32, i32) {
    %c0_i32 = arith.constant 0 : i32
    %c0_i32_0 = arith.constant 0 : i32
    %c0_i32_1 = arith.constant 0 : i32
    return %arg0, %c0_i32, %arg1, %c0_i32_0 : i32, i32, i32, i32
  }
  func.func @transform_1(%arg0: i32, %arg1: i32, %arg2: memref<18xf32, #tpu.memory_space<smem>>) -> (i32, i32, i32, i32) {
    %c0_i32 = arith.constant 0 : i32
    %c0_i32_0 = arith.constant 0 : i32
    %c0_i32_1 = arith.constant 0 : i32
    return %arg0, %c0_i32, %arg1, %c0_i32_0 : i32, i32, i32, i32
  }
}

</mosaic_0001>

<bundles_post_ra>
// kernel: backprojection.1
= control target key start
LH: loop header
LB: loop body
LE: loop exit
PB: predicated region body
PF: predicated region fallthrough
CT: control target
= control target key end

     0   :  { %s385_s12 = smov [#allocation3]   ;;  %s466_s0 = inlined_call_operand.vmem [shape: f32[18], index: 0, kind: input, shape index: {}]   ;;  %s467_s1 = inlined_call_operand.vmem [shape: f32[2,1,2,128], index: 1, kind: input, shape index: {}]   ;;  %s468_s2 = inlined_call_operand.vmem [shape: f32[2,4,2,128], index: 2, kind: output, shape index: {}]  }
   0x1   :  { %s8_s11 = sshll.u32 %s466_s0, 4  ;;  %s9_s11 = int_to_ptr.vmem [resolvable:$true] %s8_s11 }
   0x2   :  { %11 = dma.vmem_to_smem %s9_s11, 16, %s385_s12, [#allocation2] }
   0x3   :  { %371 = dma.done.wait [#allocation2], 16 }
   0x4   :  { %372 = vsyncadd [#allocation2], 4294967280 }
   0x5   :  { %14 = sfence }
   0x6   :  { %s406_s13 = smov 0   ;;  %s408_s14 = smov 0  }
   0x7   :  { %s410_s15 = smov 0  }
   0x8 LB: > { %s32_s0 = sadd.s32 1, %s379_s14  ;;  %p310_p0 = scmp.ge.s32.totalorder %s383_s15, 1  ;;  %s383_s15 = sphi %s410_s15, %s20_s15   ;;  %s379_s14 = sphi %s408_s14, %s470_s14   ;;  %s375_s13 = sphi %s406_s13, %s469_s13  }
   0x9   : > { %p34_p1 = scmp.ge.s32.totalorder %s32_s0, 2  ;;  %p114_p2 = scmp.lt.s32.totalorder %s383_s15, 3 }
   0xb   : > { %s472_s0 = smov (%p34_p1, %s32_s0), 0  ;;  %p115_p3 = pnand %p310_p0, %p114_p2 }
   0xc   : > { %p139_p4 = scmp.lt.s32.totalorder (!%p115_p3), %s375_s13, 1  ;;  %s432_s21 = smul.u32 (!%p115_p3), 9, %s375_s13 }
   0xd   : > { %118 = sbr.rel (%p115_p3) target bundleno = 57 (0x39), region = 24 }
   0xe   : > { %s179_s22 = sadd.s32 (!%p115_p3), 1, %s432_s21  ;;  %s185_s23 = sadd.s32 (!%p115_p3), 4, %s432_s21 }
   0xf   : > { %s438_s24 = sld [smem:[#allocation3 + %s432_s21]] (!%p115_p3)  ;;  %s191_s25 = sadd.s32 (!%p115_p3), 7, %s432_s21 }
  0x10   : > { %s441_s26 = sld [smem:[#allocation3 + %s179_s22]] (!%p115_p3)  ;;  %s183_s27 = sadd.s32 (!%p115_p3), 3, %s432_s21 }
  0x11   : > { %s186_s28 = sld [smem:[#allocation3 + %s185_s23]] (!%p115_p3)  ;;  %s189_s29 = sadd.s32 (!%p115_p3), 6, %s432_s21 }
  0x12   : > { %v155_v0 = vlaneseq  ;;  %s424_s16 = scalar_select %p139_p4, %s375_s13, 1  ;;  %v386_v5 = vmov 1.0   ;;  %v387_v11 = vmov 0.0  }
  0x13   : > { %s192_s30 = sld [smem:[#allocation3 + %s191_s25]]  ;;  %s181_s3 = sadd.s32 2, %s432_s21 }
  0x14   : > { %v156_v1 = vshrl.u32 %v155_v0, 7  ;;  %v159_v2 = vand.u32 127, %v155_v0  ;;  %s319_s17 = sshll.u32 %s424_s16, 3  ;;  %s184_s4 = sld [smem:[#allocation3 + %s183_s27]] }
  0x15   : > { %s430_s20 = scalar_lea.vmem %s468_s2, %s319_s17  ;;  %s187_s5 = sadd.s32 5, %s432_s21  ;;  %v195_v20 = vstv %s438_s24 }
  0x16   : > { %v157_v3 = vmul.u32 128, %v156_v1  ;;  %316 = vst [vmem:[%s430_s20 + $0x6] sm:$0x3] %v386_v5  ;;  %s190_s6 = sld [smem:[#allocation3 + %s189_s29]]  ;;  %s193_s7 = sadd.s32 8, %s432_s21  ;;  %v197_v16 = vstv %s441_s26 }
  0x17   : > { %s182_s8 = sld [smem:[#allocation3 + %s181_s3]]  ;;  %v206_v17 = vstv %s186_s28  ;;  %s311_s11 = sshll.u32 %s424_s16, 1 }
  0x18   : > { %v160_v4 = vadd.s32 %v159_v2, %v157_v3  ;;  %s188_s9 = sld [smem:[#allocation3 + %s187_s5]]  ;;  %s145_s17 = scalar_lea.vmem %s467_s1, %s311_s11 }
  0x19   : > { %s194_s10 = sld [smem:[#allocation3 + %s193_s7]]  ;;  %v216_v18 = vstv %s192_s30  ;;  %v154_v36 = vld [vmem:[%s145_s17] sm:$0x3] }
  0x1a   : > { %v164_v6 = vcvt.s32.f32 %v160_v4  ;;  %v204_v21 = vstv %s184_s4 }
  0x1c   : > { %v165_v7 = vmul.f32 0.0625, %v164_v6  ;;  %v214_v22 = vstv %s190_s6 }
  0x1d   : > { %v200_v30 = vstv %s182_s8 }
  0x1e   : > { %v166_v8 = vfloor.f32 %v165_v7  ;;  %v209_v31 = vstv %s188_s9 }
  0x1f   : > { %v219_v32 = vstv %s194_s10 }
  0x20   : > { %v167_v9 = vmul.f32 16.0, %v166_v8 }
  0x22   : > { %v168_v10 = vsub.f32 %v164_v6, %v167_v9 }
  0x24   : > { %vm169_vm0 = vcmp.ge.f32.partialorder %v168_v10, 16.0  ;;  %vm172_vm1 = vcmp.lt.f32.partialorder %v168_v10, 0.0 }
  0x25   : > { %v170_v12 = vsel %vm169_vm0, 1.0, %v387_v11  ;;  %v173_v13 = vsel %vm172_vm1, 1.0, %v387_v11 }
  0x26   : > { %v171_v14 = vadd.f32 %v170_v12, %v166_v8 }
  0x28   : > { %v174_v15 = vsub.f32 %v171_v14, %v173_v13 }
  0x2a   : > { %v175_v19 = vmul.f32 16.0, %v174_v15  ;;  %v198_v24 = vmul.f32 %v197_v16, %v174_v15  ;;  %v207_v25 = vmul.f32 %v206_v17, %v174_v15  ;;  %v217_v26 = vmul.f32 %v216_v18, %v174_v15 }
  0x2c   : > { %v176_v23 = vsub.f32 %v164_v6, %v175_v19 }
  0x2e   : > { %v196_v27 = vmul.f32 %v195_v20, %v176_v23  ;;  %v205_v28 = vmul.f32 %v204_v21, %v176_v23  ;;  %v215_v29 = vmul.f32 %v214_v22, %v176_v23 }
  0x30   : > { %v199_v33 = vadd.f32 %v198_v24, %v196_v27  ;;  %v208_v34 = vadd.f32 %v207_v25, %v205_v28  ;;  %v218_v35 = vadd.f32 %v217_v26, %v215_v29 }
  0x32   : > { %v201_v37 = vadd.f32 %v200_v30, %v199_v33  ;;  %v210_v38 = vadd.f32 %v209_v31, %v208_v34  ;;  %v220_v39 = vadd.f32 %v219_v32, %v218_v35 }
  0x34   : > { %v202_v40 = vmul.f32 %v201_v37, %v154_v36  ;;  %v211_v41 = vmul.f32 %v210_v38, %v154_v36  ;;  %v221_v42 = vmul.f32 %v220_v39, %v154_v36 }
  0x36   : > { %203 = vst [vmem:[%s430_s20] sm:$0x3] %v202_v40 }
  0x37   : > { %314 = vst [vmem:[%s430_s20 + $0x2] sm:$0x3] %v211_v41 }
  0x38   : > { %315 = vst [vmem:[%s430_s20 + $0x4] sm:$0x3] %v221_v42 }
  0x39 PF: > { %s20_s15 = sadd.s32 1, %s383_s15   ;;  %s469_s13 = smov %s379_s14 }
  0x3a   : > { %p17_p5 = scmp.ge.s32.totalorder %s20_s15, 4   ;;  %s470_s14 = smov %s472_s0 }
  0x3c   :  { %19 = sbr.rel (!%p17_p5) target bundleno = 8 (0x8), region = 57 }

</bundles_post_ra>
